<compile_context>
chip_gen: v6e
topology: v6e:2x2x1
jax: 0.10.0
libtpu: 0.0.40
codegen_flags: <defaults>
</compile_context>

<pallas_src>
import functools

import jax
import jax.numpy as jnp
from jax.experimental import pallas as pl
from jax.experimental.pallas import tpu as pltpu


# ----------------------------------------------------------------------------
# Pallas kernel
# ----------------------------------------------------------------------------
def make_wavenet_kernel(T, N, C, dilations, K):
    """Kernel body for one packed block of Bblk batch elements (N = Bblk*T)."""

    def kernel(x_ref,         # (1, N)       packed input slab
               in_w_ref,      # (C, 1)       input 1x1 conv weight
               in_b_ref,      # (C, 1)
               conv_w_ref,    # (L, 2C, K*C) dilated conv weights (taps fused)
               conv_b_ref,    # (L, 2C, 1)
               skip_w_ref,    # (L, C, C)
               skip_b_ref,    # (L, C, 1)
               out_w_ref,     # (L, C, C)
               out_b_ref,     # (L, C, 1)
               post_w_ref,    # (L, C, 1)    post 1x1 conv weight, per layer
               post_b_ref,    # (1,)         scalar bias in SMEM
               o_ref,         # (1, N)       packed output slab
               stack_ref):    # (K*C, N)     VMEM scratch shared by all layers
        x_row = x_ref[...]                                   # (1, N)

        # input_conv (1 -> C channels): pure VPU broadcast FMA.
        h = in_w_ref[...] * x_row + in_b_ref[...]            # (C, N)

        # post_conv is linear in the concatenated skips, so accumulate its
        # contribution layer by layer; scalar bias added once at the end.
        skip_acc = jnp.zeros((1, N), jnp.float32)

        # Time index within each packed batch segment.  Hoisted once (JAX does
        # not CSE broadcast/iota inside loops).
        t_in_seg = jax.lax.broadcasted_iota(jnp.int32, (C, N), 1) % T

        for l, d in enumerate(dilations):
            res = h

            # First tap whose causal shift is < T (later taps always valid:
            # k = K-1 has shift 0).  Earlier taps are identically zero and are
            # dropped together with their weight columns.
            k0 = min(k for k in range(K) if (K - 1 - k) * d < T)

            # Slice-write the causally shifted taps into the shared scratch.
            for k in range(k0, K):
                shift = (K - 1 - k) * d
                if shift == 0:
                    stack_ref[k * C:(k + 1) * C, :] = res
                else:
                    rolled = pltpu.roll(res, shift, axis=1)   # XLU lane rotate
                    stack_ref[k * C:(k + 1) * C, :] = jnp.where(
                        t_in_seg >= shift, rolled, 0.0)

            # dilated causal conv, taps fused:
            # (2C, (K-k0)*C) @ ((K-k0)*C, N) -> (2C, N)
            y = (jnp.dot(conv_w_ref[l][:, k0 * C:], stack_ref[k0 * C:, :],
                         preferred_element_type=jnp.float32)
                 + conv_b_ref[l])

            # gated activation
            gate = jnp.tanh(y[:C]) * jax.nn.sigmoid(y[C:])    # (C, N)

            # skip 1x1 conv
            s = (jnp.dot(skip_w_ref[l], gate,
                         preferred_element_type=jnp.float32)
                 + skip_b_ref[l])                              # (C, N)

            # out 1x1 conv + residual
            h = (jnp.dot(out_w_ref[l], s,
                         preferred_element_type=jnp.float32)
                 + out_b_ref[l] + res)

            # post_conv contribution of this layer's skip:
            # 1-output-channel conv == VPU multiply + sublane reduce.
            skip_acc = skip_acc + jnp.sum(post_w_ref[l] * s, axis=0,
                                          keepdims=True)

        # Lane-dense store: (1, N) with N a multiple of 128 (unmasked vst).
        o_ref[...] = (skip_acc + post_b_ref[0]).astype(o_ref.dtype)

    return kernel


def _choose_batch_block(B, T, target_lanes=512):
    """Smallest divisor of B whose packed width Bblk*T is a multiple of 128 and
    >= target_lanes; else the largest lane-dense divisor; else B."""
    best = None
    for d in range(1, B + 1):
        if B % d:
            continue
        n = d * T
        if n % 128 == 0:
            if n >= target_lanes:
                return d
            best = d
    return best if best is not None else B


def wavenet_forward(x, kp, dilations, kernel_size):
    """x: (B, T, 1) -> (B, T, 1), matching the PyTorch forward interface."""
    B, T, _ = x.shape
    C = kp["in_w"].shape[0]
    K = kernel_size

    Bblk = _choose_batch_block(B, T)
    G = B // Bblk
    N = Bblk * T

    kernel = make_wavenet_kernel(T, N, C, dilations, K)

    # (B, T, 1) -> (G, Bblk*T): pure row-major reshape; time stays contiguous
    # within each batch segment, segments are concatenated along lanes.
    x_packed = x.reshape(G, N)

    vmem_args = (x_packed,
                 kp["in_w"], kp["in_b"],
                 kp["conv_w"], kp["conv_b"],
                 kp["skip_w"], kp["skip_b"],
                 kp["out_w"], kp["out_b"],
                 kp["post_w"])

    def weight_spec(a):
        # Constant block index -> stays VMEM-resident across grid steps.
        return pl.BlockSpec(a.shape, lambda g, nd=a.ndim: (0,) * nd)

    in_specs = ([pl.BlockSpec((1, N), lambda g: (g, 0))]
                + [weight_spec(a) for a in vmem_args[1:]]
                + [pl.BlockSpec(memory_space=pltpu.MemorySpace.SMEM)])

    out = pl.pallas_call(
        kernel,
        grid=(G,),
        in_specs=in_specs,
        out_specs=pl.BlockSpec((1, N), lambda g: (g, 0)),
        out_shape=jax.ShapeDtypeStruct((G, N), jnp.float32),
        scratch_shapes=[pltpu.VMEM((K * C, N), jnp.float32)],
        compiler_params=pltpu.CompilerParams(
            dimension_semantics=("parallel",)),
    )(*vmem_args, kp["post_b"])

    return out.reshape(B, T, 1)


# ----------------------------------------------------------------------------
# Parameter glue (PyTorch Conv1d layout -> kernel layout)
# ----------------------------------------------------------------------------
def prepare_kernel_params(nat, C, L, K):
    # conv weight (L, 2C, C, K) -> (L, 2C, K*C), k-major to match the stacked
    # shifted activations.
    conv_w = jnp.transpose(nat["conv_w"], (0, 1, 3, 2)).reshape(L, 2 * C, K * C)
    return {
        "in_w":   nat["in_w"][:, 0, :],                               # (C, 1)
        "in_b":   nat["in_b"][:, None],                               # (C, 1)
        "conv_w": conv_w,                                             # (L, 2C, K*C)
        "conv_b": nat["conv_b"][:, :, None],                          # (L, 2C, 1)
        "skip_w": nat["skip_w"][..., 0],                              # (L, C, C)
        "skip_b": nat["skip_b"][:, :, None],                          # (L, C, 1)
        "out_w":  nat["out_w"][..., 0],                               # (L, C, C)
        "out_b":  nat["out_b"][:, :, None],                           # (L, C, 1)
        "post_w": nat["post_w"][0, :, 0].reshape(L, C)[:, :, None],   # (L, C, 1)
        "post_b": nat["post_b"].reshape(-1),                          # (1,) SMEM
    }


# ----------------------------------------------------------------------------
# Plain-JAX reference (mirrors the PyTorch forward) for verification
# ----------------------------------------------------------------------------
def wavenet_ref(x, nat, dilations, K):
    B, T, _ = x.shape
    C = nat["in_w"].shape[0]
    h = x * nat["in_w"][:, 0, 0][None, None, :] + nat["in_b"][None, None, :]
    skip_sum = jnp.zeros((B, T, 1), jnp.float32)
    for l, d in enumerate(dilations):
        res = h
        y = jnp.zeros((B, T, 2 * C), jnp.float32) + nat["conv_b"][l][None, None, :]
        for k in range(K):
            shift = (K - 1 - k) * d
            if shift >= T:
                continue
            if shift == 0:
                hs = res
            else:
                hs = jnp.concatenate(
                    [jnp.zeros((B, shift, C), jnp.float32), res[:, :T - shift]],
                    axis=1)
            y = y + jnp.einsum("btc,oc->bto", hs, nat["conv_w"][l][:, :, k])
        gate = jnp.tanh(y[..., :C]) * jax.nn.sigmoid(y[..., C:])
        s = (jnp.einsum("btc,oc->bto", gate, nat["skip_w"][l][:, :, 0])
             + nat["skip_b"][l][None, None, :])
        h = (jnp.einsum("btc,oc->bto", s, nat["out_w"][l][:, :, 0])
             + nat["out_b"][l][None, None, :] + res)
        skip_sum = skip_sum + jnp.einsum(
            "btc,c->bt", s, nat["post_w"][0, l * C:(l + 1) * C, 0])[..., None]
    return skip_sum + nat["post_b"][0]


# ----------------------------------------------------------------------------
# Demo / self-check
# ----------------------------------------------------------------------------
if __name__ == "__main__":
    # Small WaveNet config: num_channels=8, num_layers=2, num_repeats=2, K=3
    B, T = 2, 64
    C = 8
    num_layers, num_repeats, K = 2, 2, 3
    dilations = [2 ** d for d in range(num_layers)] * num_repeats
    L = len(dilations)

    key = jax.random.PRNGKey(0)
    ks = jax.random.split(key, 12)
    sc = 0.3
    # Parameters in native PyTorch Conv1d layout (out_ch, in_ch, k).
    nat = {
        "in_w":   jax.random.normal(ks[0], (C, 1, 1), jnp.float32) * sc,
        "in_b":   jax.random.normal(ks[1], (C,), jnp.float32) * sc,
        "conv_w": jax.random.normal(ks[2], (L, 2 * C, C, K), jnp.float32) * sc,
        "conv_b": jax.random.normal(ks[3], (L, 2 * C), jnp.float32) * sc,
        "skip_w": jax.random.normal(ks[4], (L, C, C, 1), jnp.float32) * sc,
        "skip_b": jax.random.normal(ks[5], (L, C), jnp.float32) * sc,
        "out_w":  jax.random.normal(ks[6], (L, C, C, 1), jnp.float32) * sc,
        "out_b":  jax.random.normal(ks[7], (L, C), jnp.float32) * sc,
        "post_w": jax.random.normal(ks[8], (1, L * C, 1), jnp.float32) * sc,
        "post_b": jax.random.normal(ks[9], (1,), jnp.float32) * sc,
    }
    x = jax.random.normal(ks[10], (B, T, 1), jnp.float32)

    kp = prepare_kernel_params(nat, C, L, K)

    run = jax.jit(functools.partial(
        wavenet_forward, dilations=dilations, kernel_size=K))
    out = jax.block_until_ready(run(x, kp))

    ref = wavenet_ref(x, nat, dilations, K)
    assert out.shape == (B, T, 1)
    err = float(jnp.max(jnp.abs(out - ref)))
    assert err < 1e-4, f"mismatch vs JAX reference: {err}"

    print("KERNEL_OK")
</pallas_src>

<mosaic_0001>
module attributes {stable_mosaic.version = 11 : i64} {
  func.func @kernel(%arg0: i32, %arg1: memref<1x128xf32, #tpu.memory_space<vmem>>, %arg2: memref<8x1xf32, #tpu.memory_space<vmem>>, %arg3: memref<8x1xf32, #tpu.memory_space<vmem>>, %arg4: memref<4x16x24xf32, #tpu.memory_space<vmem>>, %arg5: memref<4x16x1xf32, #tpu.memory_space<vmem>>, %arg6: memref<4x8x8xf32, #tpu.memory_space<vmem>>, %arg7: memref<4x8x1xf32, #tpu.memory_space<vmem>>, %arg8: memref<4x8x8xf32, #tpu.memory_space<vmem>>, %arg9: memref<4x8x1xf32, #tpu.memory_space<vmem>>, %arg10: memref<4x8x1xf32, #tpu.memory_space<vmem>>, %arg11: memref<1xf32, #tpu.memory_space<smem>>, %arg12: memref<1x128xf32, #tpu.memory_space<vmem>>, %arg13: memref<24x128xf32, #tpu.memory_space<vmem>>) attributes {dimension_semantics = [#tpu.dimension_semantics<parallel>], iteration_bounds = array<i64: 1>, scalar_prefetch = 0 : i64, scratch_operands = 1 : i64, tpu.core_type = #tpu.core_type<tc>, window_params = [{transform_indices = @transform_0, window_bounds = array<i64: 1, 128>}, {pipeline_mode = #tpu.pipeline_mode<synchronous>, transform_indices = @transform_1, window_bounds = array<i64: 8, 1>}, {pipeline_mode = #tpu.pipeline_mode<synchronous>, transform_indices = @transform_2, window_bounds = array<i64: 8, 1>}, {pipeline_mode = #tpu.pipeline_mode<synchronous>, transform_indices = @transform_3, window_bounds = array<i64: 4, 16, 24>}, {pipeline_mode = #tpu.pipeline_mode<synchronous>, transform_indices = @transform_4, window_bounds = array<i64: 4, 16, 1>}, {pipeline_mode = #tpu.pipeline_mode<synchronous>, transform_indices = @transform_5, window_bounds = array<i64: 4, 8, 8>}, {pipeline_mode = #tpu.pipeline_mode<synchronous>, transform_indices = @transform_6, window_bounds = array<i64: 4, 8, 1>}, {pipeline_mode = #tpu.pipeline_mode<synchronous>, transform_indices = @transform_7, window_bounds = array<i64: 4, 8, 8>}, {pipeline_mode = #tpu.pipeline_mode<synchronous>, transform_indices = @transform_8, window_bounds = array<i64: 4, 8, 1>}, {pipeline_mode = #tpu.pipeline_mode<synchronous>, transform_indices = @transform_9, window_bounds = array<i64: 4, 8, 1>}, {transform_indices = @transform_10, window_bounds = array<i64: 1>}, {transform_indices = @transform_11, window_bounds = array<i64: 1, 128>}]} {
    %c0 = arith.constant 0 : index
    %c0_0 = arith.constant 0 : index
    %0 = vector.load %arg1[%c0, %c0_0] : memref<1x128xf32, #tpu.memory_space<vmem>>, vector<1x128xf32>
    %c0_1 = arith.constant 0 : index
    %c0_2 = arith.constant 0 : index
    %1 = vector.load %arg2[%c0_1, %c0_2] : memref<8x1xf32, #tpu.memory_space<vmem>>, vector<8x1xf32>
    %2 = vector.broadcast %1 : vector<8x1xf32> to vector<8x128xf32>
    %3 = vector.broadcast %0 : vector<1x128xf32> to vector<8x128xf32>
    %4 = arith.mulf %2, %3 : vector<8x128xf32>
    %c0_3 = arith.constant 0 : index
    %c0_4 = arith.constant 0 : index
    %5 = vector.load %arg3[%c0_3, %c0_4] : memref<8x1xf32, #tpu.memory_space<vmem>>, vector<8x1xf32>
    %6 = vector.broadcast %5 : vector<8x1xf32> to vector<8x128xf32>
    %7 = arith.addf %4, %6 : vector<8x128xf32>
    %cst = arith.constant 0.000000e+00 : f32
    %8 = vector.broadcast %cst : f32 to vector<1x128xf32>
    %9 = tpu.iota {dimensions = array<i32: 1>} : vector<8x128xi32>
    %c64_i32 = arith.constant 64 : i32
    %c0_i32 = arith.constant 0 : i32
    %10 = arith.cmpi eq, %c64_i32, %c0_i32 : i32
    %c1_i32 = arith.constant 1 : i32
    %11 = arith.select %10, %c1_i32, %c64_i32 : i32
    %12 = vector.broadcast %11 : i32 to vector<8x128xi32>
    %13 = arith.remsi %9, %12 : vector<8x128xi32>
    %c0_i32_5 = arith.constant 0 : i32
    %14 = vector.broadcast %c0_i32_5 : i32 to vector<8x128xi32>
    %15 = arith.cmpi ne, %13, %14 : vector<8x128xi32>
    %c0_i32_6 = arith.constant 0 : i32
    %16 = vector.broadcast %c0_i32_6 : i32 to vector<8x128xi32>
    %17 = arith.cmpi slt, %13, %16 : vector<8x128xi32>
    %c0_i32_7 = arith.constant 0 : i32
    %18 = arith.cmpi slt, %11, %c0_i32_7 : i32
    %19 = vector.broadcast %18 : i1 to vector<8x128xi1>
    %20 = vector.broadcast %19 : vector<8x128xi1> to vector<8x128xi1>
    %21 = arith.xori %17, %20 : vector<8x128xi1>
    %22 = arith.andi %21, %15 : vector<8x128xi1>
    %23 = vector.broadcast %11 : i32 to vector<8x128xi32>
    %24 = arith.addi %13, %23 : vector<8x128xi32>
    %25 = arith.select %22, %24, %13 : vector<8x128xi1>, vector<8x128xi32>
    %c2_i32 = arith.constant 2 : i32
    %26 = tpu.dynamic_rotate %7 by %c2_i32 dim 1 : vector<8x128xf32>, i32 -> vector<8x128xf32>
    %c2_i32_8 = arith.constant 2 : i32
    %27 = vector.broadcast %c2_i32_8 : i32 to vector<8x128xi32>
    %28 = arith.cmpi sge, %25, %27 : vector<8x128xi32>
    %cst_9 = arith.constant 0.000000e+00 : f32
    %29 = vector.broadcast %cst_9 : f32 to vector<8x128xf32>
    %30 = arith.select %28, %26, %29 : vector<8x128xi1>, vector<8x128xf32>
    %c0_10 = arith.constant 0 : index
    %c0_11 = arith.constant 0 : index
    %31 = vector.load %arg13[%c0_10, %c0_11] : memref<24x128xf32, #tpu.memory_space<vmem>>, vector<8x128xf32>
    tpu.vector_store %arg13[%c0_10, %c0_11], %30 {strides = array<i32>} : memref<24x128xf32, #tpu.memory_space<vmem>>, vector<8x128xf32>,
    %c1_i32_12 = arith.constant 1 : i32
    %32 = tpu.dynamic_rotate %7 by %c1_i32_12 dim 1 : vector<8x128xf32>, i32 -> vector<8x128xf32>
    %c1_i32_13 = arith.constant 1 : i32
    %33 = vector.broadcast %c1_i32_13 : i32 to vector<8x128xi32>
    %34 = arith.cmpi sge, %25, %33 : vector<8x128xi32>
    %cst_14 = arith.constant 0.000000e+00 : f32
    %35 = vector.broadcast %cst_14 : f32 to vector<8x128xf32>
    %36 = arith.select %34, %32, %35 : vector<8x128xi1>, vector<8x128xf32>
    %c8 = arith.constant 8 : index
    %c0_15 = arith.constant 0 : index
    %37 = vector.load %arg13[%c8, %c0_15] : memref<24x128xf32, #tpu.memory_space<vmem>>, vector<8x128xf32>
    tpu.vector_store %arg13[%c8, %c0_15], %36 {strides = array<i32>} : memref<24x128xf32, #tpu.memory_space<vmem>>, vector<8x128xf32>,
    %c16 = arith.constant 16 : index
    %c0_16 = arith.constant 0 : index
    %38 = vector.load %arg13[%c16, %c0_16] : memref<24x128xf32, #tpu.memory_space<vmem>>, vector<8x128xf32>
    tpu.vector_store %arg13[%c16, %c0_16], %7 {strides = array<i32>} : memref<24x128xf32, #tpu.memory_space<vmem>>, vector<8x128xf32>,
    %c0_17 = arith.constant 0 : index
    %c0_18 = arith.constant 0 : index
    %c0_19 = arith.constant 0 : index
    %39 = vector.load %arg4[%c0_17, %c0_18, %c0_19] : memref<4x16x24xf32, #tpu.memory_space<vmem>>, vector<1x16x24xf32>
    %40 = vector.shape_cast %39 : vector<1x16x24xf32> to vector<16x24xf32>
    %c0_20 = arith.constant 0 : index
    %c0_21 = arith.constant 0 : index
    %41 = vector.load %arg13[%c0_20, %c0_21] : memref<24x128xf32, #tpu.memory_space<vmem>>, vector<24x128xf32>
    %cst_22 = arith.constant dense<0.000000e+00> : vector<16x128xf32>
    %42 = tpu.matmul %40, %41, %cst_22 {dimension_numbers = #tpu.dot_dimension_numbers<[1], [0], [0], [1], [0, 0, 1, 1], [], []>} : vector<16x24xf32>, vector<24x128xf32>, vector<16x128xf32> -> vector<16x128xf32>
    %c0_23 = arith.constant 0 : index
    %c0_24 = arith.constant 0 : index
    %c0_25 = arith.constant 0 : index
    %43 = vector.load %arg5[%c0_23, %c0_24, %c0_25] : memref<4x16x1xf32, #tpu.memory_space<vmem>>, vector<1x16x1xf32>
    %44 = vector.shape_cast %43 : vector<1x16x1xf32> to vector<16x1xf32>
    %45 = vector.broadcast %44 : vector<16x1xf32> to vector<16x128xf32>
    %46 = arith.addf %42, %45 : vector<16x128xf32>
    %47 = vector.extract_strided_slice %46 {offsets = [0, 0], sizes = [8, 128], strides = [1, 1]} : vector<16x128xf32> to vector<8x128xf32>
    %48 = math.tanh %47 : vector<8x128xf32>
    %49 = vector.extract_strided_slice %46 {offsets = [8, 0], sizes = [8, 128], strides = [1, 1]} : vector<16x128xf32> to vector<8x128xf32>
    %50 = arith.negf %49 : vector<8x128xf32>
    %51 = math.exp %50 : vector<8x128xf32>
    %cst_26 = arith.constant 1.000000e+00 : f32
    %52 = vector.broadcast %cst_26 : f32 to vector<8x128xf32>
    %53 = arith.addf %52, %51 : vector<8x128xf32>
    %54 = arith.divf %52, %53 : vector<8x128xf32>
    %55 = arith.mulf %48, %54 : vector<8x128xf32>
    %c0_27 = arith.constant 0 : index
    %c0_28 = arith.constant 0 : index
    %c0_29 = arith.constant 0 : index
    %56 = vector.load %arg6[%c0_27, %c0_28, %c0_29] : memref<4x8x8xf32, #tpu.memory_space<vmem>>, vector<1x8x8xf32>
    %57 = vector.shape_cast %56 : vector<1x8x8xf32> to vector<8x8xf32>
    %cst_30 = arith.constant dense<0.000000e+00> : vector<8x128xf32>
    %58 = tpu.matmul %57, %55, %cst_30 {dimension_numbers = #tpu.dot_dimension_numbers<[1], [0], [0], [1], [0, 0, 1, 1], [], []>} : vector<8x8xf32>, vector<8x128xf32>, vector<8x128xf32> -> vector<8x128xf32>
    %c0_31 = arith.constant 0 : index
    %c0_32 = arith.constant 0 : index
    %c0_33 = arith.constant 0 : index
    %59 = vector.load %arg7[%c0_31, %c0_32, %c0_33] : memref<4x8x1xf32, #tpu.memory_space<vmem>>, vector<1x8x1xf32>
    %60 = vector.shape_cast %59 : vector<1x8x1xf32> to vector<8x1xf32>
    %61 = vector.broadcast %60 : vector<8x1xf32> to vector<8x128xf32>
    %62 = arith.addf %58, %61 : vector<8x128xf32>
    %c0_34 = arith.constant 0 : index
    %c0_35 = arith.constant 0 : index
    %c0_36 = arith.constant 0 : index
    %63 = vector.load %arg8[%c0_34, %c0_35, %c0_36] : memref<4x8x8xf32, #tpu.memory_space<vmem>>, vector<1x8x8xf32>
    %64 = vector.shape_cast %63 : vector<1x8x8xf32> to vector<8x8xf32>
    %cst_37 = arith.constant dense<0.000000e+00> : vector<8x128xf32>
    %65 = tpu.matmul %64, %62, %cst_37 {dimension_numbers = #tpu.dot_dimension_numbers<[1], [0], [0], [1], [0, 0, 1, 1], [], []>} : vector<8x8xf32>, vector<8x128xf32>, vector<8x128xf32> -> vector<8x128xf32>
    %c0_38 = arith.constant 0 : index
    %c0_39 = arith.constant 0 : index
    %c0_40 = arith.constant 0 : index
    %66 = vector.load %arg9[%c0_38, %c0_39, %c0_40] : memref<4x8x1xf32, #tpu.memory_space<vmem>>, vector<1x8x1xf32>
    %67 = vector.shape_cast %66 : vector<1x8x1xf32> to vector<8x1xf32>
    %68 = vector.broadcast %67 : vector<8x1xf32> to vector<8x128xf32>
    %69 = arith.addf %65, %68 : vector<8x128xf32>
    %70 = arith.addf %69, %7 : vector<8x128xf32>
    %c0_41 = arith.constant 0 : index
    %c0_42 = arith.constant 0 : index
    %c0_43 = arith.constant 0 : index
    %71 = vector.load %arg10[%c0_41, %c0_42, %c0_43] : memref<4x8x1xf32, #tpu.memory_space<vmem>>, vector<1x8x1xf32>
    %72 = vector.shape_cast %71 : vector<1x8x1xf32> to vector<8x1xf32>
    %73 = vector.broadcast %72 : vector<8x1xf32> to vector<8x128xf32>
    %74 = arith.mulf %73, %62 : vector<8x128xf32>
    %cst_44 = arith.constant dense<0.000000e+00> : vector<128xf32>
    %75 = vector.multi_reduction <add>, %74, %cst_44 [0] : vector<8x128xf32> to vector<128xf32>
    %76 = vector.shape_cast %75 : vector<128xf32> to vector<1x128xf32>
    %77 = arith.addf %8, %76 : vector<1x128xf32>
    %c4_i32 = arith.constant 4 : i32
    %78 = tpu.dynamic_rotate %70 by %c4_i32 dim 1 : vector<8x128xf32>, i32 -> vector<8x128xf32>
    %c4_i32_45 = arith.constant 4 : i32
    %79 = vector.broadcast %c4_i32_45 : i32 to vector<8x128xi32>
    %80 = arith.cmpi sge, %25, %79 : vector<8x128xi32>
    %cst_46 = arith.constant 0.000000e+00 : f32
    %81 = vector.broadcast %cst_46 : f32 to vector<8x128xf32>
    %82 = arith.select %80, %78, %81 : vector<8x128xi1>, vector<8x128xf32>
    %c0_47 = arith.constant 0 : index
    %c0_48 = arith.constant 0 : index
    %83 = vector.load %arg13[%c0_47, %c0_48] : memref<24x128xf32, #tpu.memory_space<vmem>>, vector<8x128xf32>
    tpu.vector_store %arg13[%c0_47, %c0_48], %82 {strides = array<i32>} : memref<24x128xf32, #tpu.memory_space<vmem>>, vector<8x128xf32>,
    %c2_i32_49 = arith.constant 2 : i32
    %84 = tpu.dynamic_rotate %70 by %c2_i32_49 dim 1 : vector<8x128xf32>, i32 -> vector<8x128xf32>
    %c2_i32_50 = arith.constant 2 : i32
    %85 = vector.broadcast %c2_i32_50 : i32 to vector<8x128xi32>
    %86 = arith.cmpi sge, %25, %85 : vector<8x128xi32>
    %cst_51 = arith.constant 0.000000e+00 : f32
    %87 = vector.broadcast %cst_51 : f32 to vector<8x128xf32>
    %88 = arith.select %86, %84, %87 : vector<8x128xi1>, vector<8x128xf32>
    %c8_52 = arith.constant 8 : index
    %c0_53 = arith.constant 0 : index
    %89 = vector.load %arg13[%c8_52, %c0_53] : memref<24x128xf32, #tpu.memory_space<vmem>>, vector<8x128xf32>
    tpu.vector_store %arg13[%c8_52, %c0_53], %88 {strides = array<i32>} : memref<24x128xf32, #tpu.memory_space<vmem>>, vector<8x128xf32>,
    %c16_54 = arith.constant 16 : index
    %c0_55 = arith.constant 0 : index
    %90 = vector.load %arg13[%c16_54, %c0_55] : memref<24x128xf32, #tpu.memory_space<vmem>>, vector<8x128xf32>
    tpu.vector_store %arg13[%c16_54, %c0_55], %70 {strides = array<i32>} : memref<24x128xf32, #tpu.memory_space<vmem>>, vector<8x128xf32>,
    %c1 = arith.constant 1 : index
    %c0_56 = arith.constant 0 : index
    %c0_57 = arith.constant 0 : index
    %91 = vector.load %arg4[%c1, %c0_56, %c0_57] : memref<4x16x24xf32, #tpu.memory_space<vmem>>, vector<1x16x24xf32>
    %92 = vector.shape_cast %91 : vector<1x16x24xf32> to vector<16x24xf32>
    %c0_58 = arith.constant 0 : index
    %c0_59 = arith.constant 0 : index
    %93 = vector.load %arg13[%c0_58, %c0_59] : memref<24x128xf32, #tpu.memory_space<vmem>>, vector<24x128xf32>
    %cst_60 = arith.constant dense<0.000000e+00> : vector<16x128xf32>
    %94 = tpu.matmul %92, %93, %cst_60 {dimension_numbers = #tpu.dot_dimension_numbers<[1], [0], [0], [1], [0, 0, 1, 1], [], []>} : vector<16x24xf32>, vector<24x128xf32>, vector<16x128xf32> -> vector<16x128xf32>
    %c1_61 = arith.constant 1 : index
    %c0_62 = arith.constant 0 : index
    %c0_63 = arith.constant 0 : index
    %95 = vector.load %arg5[%c1_61, %c0_62, %c0_63] : memref<4x16x1xf32, #tpu.memory_space<vmem>>, vector<1x16x1xf32>
    %96 = vector.shape_cast %95 : vector<1x16x1xf32> to vector<16x1xf32>
    %97 = vector.broadcast %96 : vector<16x1xf32> to vector<16x128xf32>
    %98 = arith.addf %94, %97 : vector<16x128xf32>
    %99 = vector.extract_strided_slice %98 {offsets = [0, 0], sizes = [8, 128], strides = [1, 1]} : vector<16x128xf32> to vector<8x128xf32>
    %100 = math.tanh %99 : vector<8x128xf32>
    %101 = vector.extract_strided_slice %98 {offsets = [8, 0], sizes = [8, 128], strides = [1, 1]} : vector<16x128xf32> to vector<8x128xf32>
    %102 = arith.negf %101 : vector<8x128xf32>
    %103 = math.exp %102 : vector<8x128xf32>
    %cst_64 = arith.constant 1.000000e+00 : f32
    %104 = vector.broadcast %cst_64 : f32 to vector<8x128xf32>
    %105 = arith.addf %104, %103 : vector<8x128xf32>
    %106 = arith.divf %104, %105 : vector<8x128xf32>
    %107 = arith.mulf %100, %106 : vector<8x128xf32>
    %c1_65 = arith.constant 1 : index
    %c0_66 = arith.constant 0 : index
    %c0_67 = arith.constant 0 : index
    %108 = vector.load %arg6[%c1_65, %c0_66, %c0_67] : memref<4x8x8xf32, #tpu.memory_space<vmem>>, vector<1x8x8xf32>
    %109 = vector.shape_cast %108 : vector<1x8x8xf32> to vector<8x8xf32>
    %cst_68 = arith.constant dense<0.000000e+00> : vector<8x128xf32>
    %110 = tpu.matmul %109, %107, %cst_68 {dimension_numbers = #tpu.dot_dimension_numbers<[1], [0], [0], [1], [0, 0, 1, 1], [], []>} : vector<8x8xf32>, vector<8x128xf32>, vector<8x128xf32> -> vector<8x128xf32>
    %c1_69 = arith.constant 1 : index
    %c0_70 = arith.constant 0 : index
    %c0_71 = arith.constant 0 : index
    %111 = vector.load %arg7[%c1_69, %c0_70, %c0_71] : memref<4x8x1xf32, #tpu.memory_space<vmem>>, vector<1x8x1xf32>
    %112 = vector.shape_cast %111 : vector<1x8x1xf32> to vector<8x1xf32>
    %113 = vector.broadcast %112 : vector<8x1xf32> to vector<8x128xf32>
    %114 = arith.addf %110, %113 : vector<8x128xf32>
    %c1_72 = arith.constant 1 : index
    %c0_73 = arith.constant 0 : index
    %c0_74 = arith.constant 0 : index
    %115 = vector.load %arg8[%c1_72, %c0_73, %c0_74] : memref<4x8x8xf32, #tpu.memory_space<vmem>>, vector<1x8x8xf32>
    %116 = vector.shape_cast %115 : vector<1x8x8xf32> to vector<8x8xf32>
    %cst_75 = arith.constant dense<0.000000e+00> : vector<8x128xf32>
    %117 = tpu.matmul %116, %114, %cst_75 {dimension_numbers = #tpu.dot_dimension_numbers<[1], [0], [0], [1], [0, 0, 1, 1], [], []>} : vector<8x8xf32>, vector<8x128xf32>, vector<8x128xf32> -> vector<8x128xf32>
    %c1_76 = arith.constant 1 : index
    %c0_77 = arith.constant 0 : index
    %c0_78 = arith.constant 0 : index
    %118 = vector.load %arg9[%c1_76, %c0_77, %c0_78] : memref<4x8x1xf32, #tpu.memory_space<vmem>>, vector<1x8x1xf32>
    %119 = vector.shape_cast %118 : vector<1x8x1xf32> to vector<8x1xf32>
    %120 = vector.broadcast %119 : vector<8x1xf32> to vector<8x128xf32>
    %121 = arith.addf %117, %120 : vector<8x128xf32>
    %122 = arith.addf %121, %70 : vector<8x128xf32>
    %c1_79 = arith.constant 1 : index
    %c0_80 = arith.constant 0 : index
    %c0_81 = arith.constant 0 : index
    %123 = vector.load %arg10[%c1_79, %c0_80, %c0_81] : memref<4x8x1xf32, #tpu.memory_space<vmem>>, vector<1x8x1xf32>
    %124 = vector.shape_cast %123 : vector<1x8x1xf32> to vector<8x1xf32>
    %125 = vector.broadcast %124 : vector<8x1xf32> to vector<8x128xf32>
    %126 = arith.mulf %125, %114 : vector<8x128xf32>
    %cst_82 = arith.constant dense<0.000000e+00> : vector<128xf32>
    %127 = vector.multi_reduction <add>, %126, %cst_82 [0] : vector<8x128xf32> to vector<128xf32>
    %128 = vector.shape_cast %127 : vector<128xf32> to vector<1x128xf32>
    %129 = arith.addf %77, %128 : vector<1x128xf32>
    %c2_i32_83 = arith.constant 2 : i32
    %130 = tpu.dynamic_rotate %122 by %c2_i32_83 dim 1 : vector<8x128xf32>, i32 -> vector<8x128xf32>
    %c2_i32_84 = arith.constant 2 : i32
    %131 = vector.broadcast %c2_i32_84 : i32 to vector<8x128xi32>
    %132 = arith.cmpi sge, %25, %131 : vector<8x128xi32>
    %cst_85 = arith.constant 0.000000e+00 : f32
    %133 = vector.broadcast %cst_85 : f32 to vector<8x128xf32>
    %134 = arith.select %132, %130, %133 : vector<8x128xi1>, vector<8x128xf32>
    %c0_86 = arith.constant 0 : index
    %c0_87 = arith.constant 0 : index
    %135 = vector.load %arg13[%c0_86, %c0_87] : memref<24x128xf32, #tpu.memory_space<vmem>>, vector<8x128xf32>
    tpu.vector_store %arg13[%c0_86, %c0_87], %134 {strides = array<i32>} : memref<24x128xf32, #tpu.memory_space<vmem>>, vector<8x128xf32>,
    %c1_i32_88 = arith.constant 1 : i32
    %136 = tpu.dynamic_rotate %122 by %c1_i32_88 dim 1 : vector<8x128xf32>, i32 -> vector<8x128xf32>
    %c1_i32_89 = arith.constant 1 : i32
    %137 = vector.broadcast %c1_i32_89 : i32 to vector<8x128xi32>
    %138 = arith.cmpi sge, %25, %137 : vector<8x128xi32>
    %cst_90 = arith.constant 0.000000e+00 : f32
    %139 = vector.broadcast %cst_90 : f32 to vector<8x128xf32>
    %140 = arith.select %138, %136, %139 : vector<8x128xi1>, vector<8x128xf32>
    %c8_91 = arith.constant 8 : index
    %c0_92 = arith.constant 0 : index
    %141 = vector.load %arg13[%c8_91, %c0_92] : memref<24x128xf32, #tpu.memory_space<vmem>>, vector<8x128xf32>
    tpu.vector_store %arg13[%c8_91, %c0_92], %140 {strides = array<i32>} : memref<24x128xf32, #tpu.memory_space<vmem>>, vector<8x128xf32>,
    %c16_93 = arith.constant 16 : index
    %c0_94 = arith.constant 0 : index
    %142 = vector.load %arg13[%c16_93, %c0_94] : memref<24x128xf32, #tpu.memory_space<vmem>>, vector<8x128xf32>
    tpu.vector_store %arg13[%c16_93, %c0_94], %122 {strides = array<i32>} : memref<24x128xf32, #tpu.memory_space<vmem>>, vector<8x128xf32>,
    %c2 = arith.constant 2 : index
    %c0_95 = arith.constant 0 : index
    %c0_96 = arith.constant 0 : index
    %143 = vector.load %arg4[%c2, %c0_95, %c0_96] : memref<4x16x24xf32, #tpu.memory_space<vmem>>, vector<1x16x24xf32>
    %144 = vector.shape_cast %143 : vector<1x16x24xf32> to vector<16x24xf32>
    %c0_97 = arith.constant 0 : index
    %c0_98 = arith.constant 0 : index
    %145 = vector.load %arg13[%c0_97, %c0_98] : memref<24x128xf32, #tpu.memory_space<vmem>>, vector<24x128xf32>
    %cst_99 = arith.constant dense<0.000000e+00> : vector<16x128xf32>
    %146 = tpu.matmul %144, %145, %cst_99 {dimension_numbers = #tpu.dot_dimension_numbers<[1], [0], [0], [1], [0, 0, 1, 1], [], []>} : vector<16x24xf32>, vector<24x128xf32>, vector<16x128xf32> -> vector<16x128xf32>
    %c2_100 = arith.constant 2 : index
    %c0_101 = arith.constant 0 : index
    %c0_102 = arith.constant 0 : index
    %147 = vector.load %arg5[%c2_100, %c0_101, %c0_102] : memref<4x16x1xf32, #tpu.memory_space<vmem>>, vector<1x16x1xf32>
    %148 = vector.shape_cast %147 : vector<1x16x1xf32> to vector<16x1xf32>
    %149 = vector.broadcast %148 : vector<16x1xf32> to vector<16x128xf32>
    %150 = arith.addf %146, %149 : vector<16x128xf32>
    %151 = vector.extract_strided_slice %150 {offsets = [0, 0], sizes = [8, 128], strides = [1, 1]} : vector<16x128xf32> to vector<8x128xf32>
    %152 = math.tanh %151 : vector<8x128xf32>
    %153 = vector.extract_strided_slice %150 {offsets = [8, 0], sizes = [8, 128], strides = [1, 1]} : vector<16x128xf32> to vector<8x128xf32>
    %154 = arith.negf %153 : vector<8x128xf32>
    %155 = math.exp %154 : vector<8x128xf32>
    %cst_103 = arith.constant 1.000000e+00 : f32
    %156 = vector.broadcast %cst_103 : f32 to vector<8x128xf32>
    %157 = arith.addf %156, %155 : vector<8x128xf32>
    %158 = arith.divf %156, %157 : vector<8x128xf32>
    %159 = arith.mulf %152, %158 : vector<8x128xf32>
    %c2_104 = arith.constant 2 : index
    %c0_105 = arith.constant 0 : index
    %c0_106 = arith.constant 0 : index
    %160 = vector.load %arg6[%c2_104, %c0_105, %c0_106] : memref<4x8x8xf32, #tpu.memory_space<vmem>>, vector<1x8x8xf32>
    %161 = vector.shape_cast %160 : vector<1x8x8xf32> to vector<8x8xf32>
    %cst_107 = arith.constant dense<0.000000e+00> : vector<8x128xf32>
    %162 = tpu.matmul %161, %159, %cst_107 {dimension_numbers = #tpu.dot_dimension_numbers<[1], [0], [0], [1], [0, 0, 1, 1], [], []>} : vector<8x8xf32>, vector<8x128xf32>, vector<8x128xf32> -> vector<8x128xf32>
    %c2_108 = arith.constant 2 : index
    %c0_109 = arith.constant 0 : index
    %c0_110 = arith.constant 0 : index
    %163 = vector.load %arg7[%c2_108, %c0_109, %c0_110] : memref<4x8x1xf32, #tpu.memory_space<vmem>>, vector<1x8x1xf32>
    %164 = vector.shape_cast %163 : vector<1x8x1xf32> to vector<8x1xf32>
    %165 = vector.broadcast %164 : vector<8x1xf32> to vector<8x128xf32>
    %166 = arith.addf %162, %165 : vector<8x128xf32>
    %c2_111 = arith.constant 2 : index
    %c0_112 = arith.constant 0 : index
    %c0_113 = arith.constant 0 : index
    %167 = vector.load %arg8[%c2_111, %c0_112, %c0_113] : memref<4x8x8xf32, #tpu.memory_space<vmem>>, vector<1x8x8xf32>
    %168 = vector.shape_cast %167 : vector<1x8x8xf32> to vector<8x8xf32>
    %cst_114 = arith.constant dense<0.000000e+00> : vector<8x128xf32>
    %169 = tpu.matmul %168, %166, %cst_114 {dimension_numbers = #tpu.dot_dimension_numbers<[1], [0], [0], [1], [0, 0, 1, 1], [], []>} : vector<8x8xf32>, vector<8x128xf32>, vector<8x128xf32> -> vector<8x128xf32>
    %c2_115 = arith.constant 2 : index
    %c0_116 = arith.constant 0 : index
    %c0_117 = arith.constant 0 : index
    %170 = vector.load %arg9[%c2_115, %c0_116, %c0_117] : memref<4x8x1xf32, #tpu.memory_space<vmem>>, vector<1x8x1xf32>
    %171 = vector.shape_cast %170 : vector<1x8x1xf32> to vector<8x1xf32>
    %172 = vector.broadcast %171 : vector<8x1xf32> to vector<8x128xf32>
    %173 = arith.addf %169, %172 : vector<8x128xf32>
    %174 = arith.addf %173, %122 : vector<8x128xf32>
    %c2_118 = arith.constant 2 : index
    %c0_119 = arith.constant 0 : index
    %c0_120 = arith.constant 0 : index
    %175 = vector.load %arg10[%c2_118, %c0_119, %c0_120] : memref<4x8x1xf32, #tpu.memory_space<vmem>>, vector<1x8x1xf32>
    %176 = vector.shape_cast %175 : vector<1x8x1xf32> to vector<8x1xf32>
    %177 = vector.broadcast %176 : vector<8x1xf32> to vector<8x128xf32>
    %178 = arith.mulf %177, %166 : vector<8x128xf32>
    %cst_121 = arith.constant dense<0.000000e+00> : vector<128xf32>
    %179 = vector.multi_reduction <add>, %178, %cst_121 [0] : vector<8x128xf32> to vector<128xf32>
    %180 = vector.shape_cast %179 : vector<128xf32> to vector<1x128xf32>
    %181 = arith.addf %129, %180 : vector<1x128xf32>
    %c4_i32_122 = arith.constant 4 : i32
    %182 = tpu.dynamic_rotate %174 by %c4_i32_122 dim 1 : vector<8x128xf32>, i32 -> vector<8x128xf32>
    %c4_i32_123 = arith.constant 4 : i32
    %183 = vector.broadcast %c4_i32_123 : i32 to vector<8x128xi32>
    %184 = arith.cmpi sge, %25, %183 : vector<8x128xi32>
    %cst_124 = arith.constant 0.000000e+00 : f32
    %185 = vector.broadcast %cst_124 : f32 to vector<8x128xf32>
    %186 = arith.select %184, %182, %185 : vector<8x128xi1>, vector<8x128xf32>
    %c0_125 = arith.constant 0 : index
    %c0_126 = arith.constant 0 : index
    %187 = vector.load %arg13[%c0_125, %c0_126] : memref<24x128xf32, #tpu.memory_space<vmem>>, vector<8x128xf32>
    tpu.vector_store %arg13[%c0_125, %c0_126], %186 {strides = array<i32>} : memref<24x128xf32, #tpu.memory_space<vmem>>, vector<8x128xf32>,
    %c2_i32_127 = arith.constant 2 : i32
    %188 = tpu.dynamic_rotate %174 by %c2_i32_127 dim 1 : vector<8x128xf32>, i32 -> vector<8x128xf32>
    %c2_i32_128 = arith.constant 2 : i32
    %189 = vector.broadcast %c2_i32_128 : i32 to vector<8x128xi32>
    %190 = arith.cmpi sge, %25, %189 : vector<8x128xi32>
    %cst_129 = arith.constant 0.000000e+00 : f32
    %191 = vector.broadcast %cst_129 : f32 to vector<8x128xf32>
    %192 = arith.select %190, %188, %191 : vector<8x128xi1>, vector<8x128xf32>
    %c8_130 = arith.constant 8 : index
    %c0_131 = arith.constant 0 : index
    %193 = vector.load %arg13[%c8_130, %c0_131] : memref<24x128xf32, #tpu.memory_space<vmem>>, vector<8x128xf32>
    tpu.vector_store %arg13[%c8_130, %c0_131], %192 {strides = array<i32>} : memref<24x128xf32, #tpu.memory_space<vmem>>, vector<8x128xf32>,
    %c16_132 = arith.constant 16 : index
    %c0_133 = arith.constant 0 : index
    %194 = vector.load %arg13[%c16_132, %c0_133] : memref<24x128xf32, #tpu.memory_space<vmem>>, vector<8x128xf32>
    tpu.vector_store %arg13[%c16_132, %c0_133], %174 {strides = array<i32>} : memref<24x128xf32, #tpu.memory_space<vmem>>, vector<8x128xf32>,
    %c3 = arith.constant 3 : index
    %c0_134 = arith.constant 0 : index
    %c0_135 = arith.constant 0 : index
    %195 = vector.load %arg4[%c3, %c0_134, %c0_135] : memref<4x16x24xf32, #tpu.memory_space<vmem>>, vector<1x16x24xf32>
    %196 = vector.shape_cast %195 : vector<1x16x24xf32> to vector<16x24xf32>
    %c0_136 = arith.constant 0 : index
    %c0_137 = arith.constant 0 : index
    %197 = vector.load %arg13[%c0_136, %c0_137] : memref<24x128xf32, #tpu.memory_space<vmem>>, vector<24x128xf32>
    %cst_138 = arith.constant dense<0.000000e+00> : vector<16x128xf32>
    %198 = tpu.matmul %196, %197, %cst_138 {dimension_numbers = #tpu.dot_dimension_numbers<[1], [0], [0], [1], [0, 0, 1, 1], [], []>} : vector<16x24xf32>, vector<24x128xf32>, vector<16x128xf32> -> vector<16x128xf32>
    %c3_139 = arith.constant 3 : index
    %c0_140 = arith.constant 0 : index
    %c0_141 = arith.constant 0 : index
    %199 = vector.load %arg5[%c3_139, %c0_140, %c0_141] : memref<4x16x1xf32, #tpu.memory_space<vmem>>, vector<1x16x1xf32>
    %200 = vector.shape_cast %199 : vector<1x16x1xf32> to vector<16x1xf32>
    %201 = vector.broadcast %200 : vector<16x1xf32> to vector<16x128xf32>
    %202 = arith.addf %198, %201 : vector<16x128xf32>
    %203 = vector.extract_strided_slice %202 {offsets = [0, 0], sizes = [8, 128], strides = [1, 1]} : vector<16x128xf32> to vector<8x128xf32>
    %204 = math.tanh %203 : vector<8x128xf32>
    %205 = vector.extract_strided_slice %202 {offsets = [8, 0], sizes = [8, 128], strides = [1, 1]} : vector<16x128xf32> to vector<8x128xf32>
    %206 = arith.negf %205 : vector<8x128xf32>
    %207 = math.exp %206 : vector<8x128xf32>
    %cst_142 = arith.constant 1.000000e+00 : f32
    %208 = vector.broadcast %cst_142 : f32 to vector<8x128xf32>
    %209 = arith.addf %208, %207 : vector<8x128xf32>
    %210 = arith.divf %208, %209 : vector<8x128xf32>
    %211 = arith.mulf %204, %210 : vector<8x128xf32>
    %c3_143 = arith.constant 3 : index
    %c0_144 = arith.constant 0 : index
    %c0_145 = arith.constant 0 : index
    %212 = vector.load %arg6[%c3_143, %c0_144, %c0_145] : memref<4x8x8xf32, #tpu.memory_space<vmem>>, vector<1x8x8xf32>
    %213 = vector.shape_cast %212 : vector<1x8x8xf32> to vector<8x8xf32>
    %cst_146 = arith.constant dense<0.000000e+00> : vector<8x128xf32>
    %214 = tpu.matmul %213, %211, %cst_146 {dimension_numbers = #tpu.dot_dimension_numbers<[1], [0], [0], [1], [0, 0, 1, 1], [], []>} : vector<8x8xf32>, vector<8x128xf32>, vector<8x128xf32> -> vector<8x128xf32>
    %c3_147 = arith.constant 3 : index
    %c0_148 = arith.constant 0 : index
    %c0_149 = arith.constant 0 : index
    %215 = vector.load %arg7[%c3_147, %c0_148, %c0_149] : memref<4x8x1xf32, #tpu.memory_space<vmem>>, vector<1x8x1xf32>
    %216 = vector.shape_cast %215 : vector<1x8x1xf32> to vector<8x1xf32>
    %217 = vector.broadcast %216 : vector<8x1xf32> to vector<8x128xf32>
    %218 = arith.addf %214, %217 : vector<8x128xf32>
    %c3_150 = arith.constant 3 : index
    %c0_151 = arith.constant 0 : index
    %c0_152 = arith.constant 0 : index
    %219 = vector.load %arg10[%c3_150, %c0_151, %c0_152] : memref<4x8x1xf32, #tpu.memory_space<vmem>>, vector<1x8x1xf32>
    %220 = vector.shape_cast %219 : vector<1x8x1xf32> to vector<8x1xf32>
    %221 = vector.broadcast %220 : vector<8x1xf32> to vector<8x128xf32>
    %222 = arith.mulf %221, %218 : vector<8x128xf32>
    %cst_153 = arith.constant dense<0.000000e+00> : vector<128xf32>
    %223 = vector.multi_reduction <add>, %222, %cst_153 [0] : vector<8x128xf32> to vector<128xf32>
    %224 = vector.shape_cast %223 : vector<128xf32> to vector<1x128xf32>
    %225 = arith.addf %181, %224 : vector<1x128xf32>
    %c0_154 = arith.constant 0 : index
    %226 = memref.load %arg11[%c0_154] : memref<1xf32, #tpu.memory_space<smem>>
    %227 = vector.broadcast %226 : f32 to vector<1x128xf32>
    %228 = arith.addf %225, %227 : vector<1x128xf32>
    %c0_155 = arith.constant 0 : index
    %c0_156 = arith.constant 0 : index
    %229 = vector.load %arg12[%c0_155, %c0_156] : memref<1x128xf32, #tpu.memory_space<vmem>>, vector<1x128xf32>
    tpu.vector_store %arg12[%c0_155, %c0_156], %228 {strides = array<i32>} : memref<1x128xf32, #tpu.memory_space<vmem>>, vector<1x128xf32>,
    return
  }
  func.func @transform_0(%arg0: i32) -> (i32, i32) {
    %c0_i32 = arith.constant 0 : i32
    %c0_i32_0 = arith.constant 0 : i32
    return %arg0, %c0_i32 : i32, i32
  }
  func.func @transform_1(%arg0: i32) -> (i32, i32) {
    %c0_i32 = arith.constant 0 : i32
    %c0_i32_0 = arith.constant 0 : i32
    %c0_i32_1 = arith.constant 0 : i32
    return %c0_i32, %c0_i32_0 : i32, i32
  }
  func.func @transform_2(%arg0: i32) -> (i32, i32) {
    %c0_i32 = arith.constant 0 : i32
    %c0_i32_0 = arith.constant 0 : i32
    %c0_i32_1 = arith.constant 0 : i32
    return %c0_i32, %c0_i32_0 : i32, i32
  }
  func.func @transform_3(%arg0: i32) -> (i32, i32, i32) {
    %c0_i32 = arith.constant 0 : i32
    %c0_i32_0 = arith.constant 0 : i32
    %c0_i32_1 = arith.constant 0 : i32
    %c0_i32_2 = arith.constant 0 : i32
    return %c0_i32, %c0_i32_0, %c0_i32_1 : i32, i32, i32
  }
  func.func @transform_4(%arg0: i32) -> (i32, i32, i32) {
    %c0_i32 = arith.constant 0 : i32
    %c0_i32_0 = arith.constant 0 : i32
    %c0_i32_1 = arith.constant 0 : i32
    %c0_i32_2 = arith.constant 0 : i32
    return %c0_i32, %c0_i32_0, %c0_i32_1 : i32, i32, i32
  }
  func.func @transform_5(%arg0: i32) -> (i32, i32, i32) {
    %c0_i32 = arith.constant 0 : i32
    %c0_i32_0 = arith.constant 0 : i32
    %c0_i32_1 = arith.constant 0 : i32
    %c0_i32_2 = arith.constant 0 : i32
    return %c0_i32, %c0_i32_0, %c0_i32_1 : i32, i32, i32
  }
  func.func @transform_6(%arg0: i32) -> (i32, i32, i32) {
    %c0_i32 = arith.constant 0 : i32
    %c0_i32_0 = arith.constant 0 : i32
    %c0_i32_1 = arith.constant 0 : i32
    %c0_i32_2 = arith.constant 0 : i32
    return %c0_i32, %c0_i32_0, %c0_i32_1 : i32, i32, i32
  }
  func.func @transform_7(%arg0: i32) -> (i32, i32, i32) {
    %c0_i32 = arith.constant 0 : i32
    %c0_i32_0 = arith.constant 0 : i32
    %c0_i32_1 = arith.constant 0 : i32
    %c0_i32_2 = arith.constant 0 : i32
    return %c0_i32, %c0_i32_0, %c0_i32_1 : i32, i32, i32
  }
  func.func @transform_8(%arg0: i32) -> (i32, i32, i32) {
    %c0_i32 = arith.constant 0 : i32
    %c0_i32_0 = arith.constant 0 : i32
    %c0_i32_1 = arith.constant 0 : i32
    %c0_i32_2 = arith.constant 0 : i32
    return %c0_i32, %c0_i32_0, %c0_i32_1 : i32, i32, i32
  }
  func.func @transform_9(%arg0: i32) -> (i32, i32, i32) {
    %c0_i32 = arith.constant 0 : i32
    %c0_i32_0 = arith.constant 0 : i32
    %c0_i32_1 = arith.constant 0 : i32
    %c0_i32_2 = arith.constant 0 : i32
    return %c0_i32, %c0_i32_0, %c0_i32_1 : i32, i32, i32
  }
  func.func @transform_10(%arg0: i32) -> i32 {
    %c0_i32 = arith.constant 0 : i32
    %c0_i32_0 = arith.constant 0 : i32
    return %c0_i32 : i32
  }
  func.func @transform_11(%arg0: i32) -> (i32, i32) {
    %c0_i32 = arith.constant 0 : i32
    %c0_i32_0 = arith.constant 0 : i32
    return %arg0, %c0_i32 : i32, i32
  }
}

</mosaic_0001>

<bundles_post_ra>
// kernel: wavenet_forward.1
= control target key start
LH: loop header
LB: loop body
LE: loop exit
PB: predicated region body
PF: predicated region fallthrough
CT: control target
= control target key end

     0   :  { %v1375_v0 = vmov 0   ;;  %vm102_vm0 = vcmask 195584   ;;  %s1376_s27 = smov 1   ;;  %s1377_s28 = smov 2   ;;  %v60_v13 = vlaneseq  ;;  %v1378_v19 = vmov 0.0   ;;  %s1658_s1 = inlined_call_operand.vmem [shape: f32[8,1], index: 1, kind: input, shape index: {}]   ;;  %s1659_s2 = inlined_call_operand.vmem [shape: f32[8,1], index: 2, kind: input, shape index: {}]   ;;  %s1660_s4 = inlined_call_operand.vmem [shape: f32[4,16,1], index: 4, kind: input, shape index: {}]   ;;  %s1661_s6 = inlined_call_operand.vmem [shape: f32[4,8,1], index: 6, kind: input, shape index: {}]   ;;  %s1662_s0 = inlined_call_operand.vmem [shape: f32[1,128], index: 0, kind: input, shape index: {}]   ;;  %s1663_s3 = inlined_call_operand.vmem [shape: f32[4,16,24], index: 3, kind: input, shape index: {}]   ;;  %s1664_s8 = inlined_call_operand.vmem [shape: f32[4,8,1], index: 8, kind: input, shape index: {}]   ;;  %s1665_s5 = inlined_call_operand.vmem [shape: f32[4,8,8], index: 5, kind: input, shape index: {}]   ;;  %s1666_s7 = inlined_call_operand.vmem [shape: f32[4,8,8], index: 7, kind: input, shape index: {}]   ;;  %s1667_s9 = inlined_call_operand.vmem [shape: f32[4,8,1], index: 9, kind: input, shape index: {}]   ;;  %s1668_s10 = inlined_call_operand.<no memory space> [shape: f32[1], index: 10, kind: input, shape index: {}]   ;;  %s1669_s11 = inlined_call_operand.vmem [shape: f32[1,128], index: 11, kind: output, shape index: {}]  }
   0x1   :  { %1349 = vset.pattern.permute.xlu0 %v1375_v0  ;;  %v40_v1 = vld [vmem:[%s1658_s1] sm:$0xff]  ;;  %1350 = vset.pattern.permute.xlu1 %v1375_v0  ;;  %v91_v3 = vld [vmem:[%s1660_s4 + $0x8] sm:$0xff]  ;;  %vm1379_vm3 = vmmov 0   ;;  %vm199_vm4 = vcmask 64512   ;;  %v1191_v38 = vld [vmem:[%s1663_s3 + $0x10] sm:$0xff]  ;;  %s1380_s21 = smov 4  }
   0x2   :  { %43 = vperm.xlu0 %1349, %v40_v1   ;;  %v53_v2 = vld [vmem:[%s1659_s2] sm:$0xff]  ;;  %v61_v14 = vand.u32 127, %v60_v13  ;;  %v86_v18 = vld [vmem:[%s1663_s3 + $0x8] sm:$0xff]  ;;  %1281 = vmatprep.subr.mxu1 %v1378_v19  ;;  %v1193_v44 = vld [vmem:[%s1660_s4 + $0x10] sm:$0xff] }
   0x3   :  { %v193_v4 = vld [vmem:[%s1661_s6] sm:$0xff]  ;;  %1283 = vmatprep.mubr.msk.f32.mxu1 %vm1379_vm3, %v1378_v19  ;;  %v1194_v45 = vld [vmem:[%s1660_s4 + $0x18] sm:$0xff]  ;;  %v1202_v46 = vld [vmem:[%s1664_s8 + $0x8] sm:$0xff] }
   0x4   :  { %v85_v5 = vld [vmem:[%s1663_s3] sm:$0xff]  ;;  %v1474_v15 = vand.u32 63, %v61_v14  ;;  %v1199_v47 = vld [vmem:[%s1661_s6 + $0x8] sm:$0xff]  ;;  %v1192_v50 = vld [vmem:[%s1663_s3 + $0x18] sm:$0xff] }
   0x5   :  { %1278 = vmatprep.mubr.msk.f32.mxu0 %vm102_vm0, %v85_v5  ;;  %v1185_v7 = vld [vmem:[%s1662_s0] ss:$0 sm:$0xff]  ;;  %v1198_v63 = vld [vmem:[%s1665_s5 + $0x8] sm:$0xff]  ;;  %v1216_v13 = vld [vmem:[%s1664_s8 + $0x10] sm:$0xff] }
   0x6   :  { %56 = vperm.xlu0 %1349, %v53_v2   ;;  %v90_v11 = vld [vmem:[%s1660_s4] sm:$0xff]  ;;  %vm81_vm1 = vcmp.ge.s32.totalorder %v1474_v15, 1  ;;  %vm76_vm2 = vcmp.ge.s32.totalorder %v1474_v15, 2  ;;  %vm370_vm5 = vcmp.ge.s32.totalorder %v1474_v15, 4  ;;  %v1213_v14 = vld [vmem:[%s1661_s6 + $0x10] sm:$0xff]  ;;  %v1226_v15 = vld [vmem:[%s1665_s5 + $0x18] sm:$0xff] }
   0x7   :  { %v274_v12 = vld [vmem:[%s1664_s8] sm:$0xff] }
   0x8   :  { %v192_v32 = vld [vmem:[%s1665_s5] sm:$0xff] }
   0x9   :  { %v273_v36 = vld [vmem:[%s1666_s7] sm:$0xff] }
   0xa   :  { %99 = vperm.xlu0 %1349, %v91_v3   ;;  %v1201_v3 = vld [vmem:[%s1666_s7 + $0x8] sm:$0xff]  ;;  %v1205_v5 = vld [vmem:[%s1663_s3 + $0x20] sm:$0xff] }
   0xe   :  { %196 = vperm.xlu0 %1349, %v193_v4  }
  0x7d   :  { %v44_v6 = vpop.permute.xlu0 %43 }
  0x7e   :  { %v52_v8 = vmul.f32 %v1185_v7, %v44_v6 }
  0x81   :  { %v57_v9 = vpop.permute.xlu0 %56 }
  0x82   :  { %v1460_v10 = vadd.f32 %v57_v9, %v52_v8 }
  0x84   :  { %79 = vrot.lane.b32.xlu1 %v1460_v10, %s1376_s27  ;;  %1272 = vmatprep.subr.mxu0 %v1460_v10 }
  0x85   :  { %1273 = vmatpush3.msra.mxu0 %v1460_v10  ;;  %v100_v20 = vpop.permute.xlu0 %99 }
  0x88   :  { %74 = vrot.lane.b32.xlu1 %v1460_v10, %s1377_s28 }
  0x89   :  { %v197_v33 = vpop.permute.xlu0 %196 }
  0x8c   :  { %94 = vperm.xlu1 %1350, %v90_v11   ;;  %v1207_v11 = vld [vmem:[%s1660_s4 + $0x20] sm:$0xff] }
  0x90   :  { %277 = vperm.xlu1 %1350, %v274_v12   ;;  %v1208_v12 = vld [vmem:[%s1660_s4 + $0x28] sm:$0xff] }
  0xf6   :  { %v80_v16 = vpop.permute.xlu1 %79 }
  0xf7   :  { %1274 = vmatprep.subr.msk.mxu0 %vm81_vm1, %v80_v16 }
  0xf8   :  { %1275 = vmatpush3.msk.msra.mxu0 %vm81_vm1, %v80_v16 }
  0xfa   :  { %v75_v17 = vpop.permute.xlu1 %74 }
  0xfb   :  { %1276 = vmatprep.subr.msk.mxu0 %vm76_vm2, %v75_v17 }
  0xfc   :  { %1277 = vmatpush3.msk.msra.mxu0 %vm76_vm2, %v75_v17 }
  0xfd   :  { %1279 = vmatmul.mubr.msk.f32.vlgmr.msra.gmra.mxu0 %vm102_vm0, %v86_v18  ;;  %v1206_v18 = vld [vmem:[%s1663_s3 + $0x28] sm:$0xff] }
  0xfe   :  { %1297 = vmatprep.mubr.msk.f32.mxu0 %vm102_vm0, %v1191_v38 }
 0x107   :  { %v95_v24 = vpop.permute.xlu1 %94 }
 0x10b   :  { %v278_v39 = vpop.permute.xlu1 %277 }
 0x1bd   :  { %v1280_v21 = vpop.f32.mrf.mxu0 }
 0x1be   :  { %v181_v22 = vadd.f32 %v1280_v21, %v100_v20 }
 0x1bf   :  { %v175_v25 = vpop.f32.mrf.mxu0 }
 0x1c0   :  { %v1188_v23 = vmul.f32 -1.442695, %v181_v22  ;;  %v176_v26 = vadd.f32 %v175_v25, %v95_v24 }
 0x1c2   :  { %1351 = vpow2.f32 %v1188_v23 }
 0x1c3   :  { %1353 = vtanh.f32 %v176_v26 }
 0x1cf   :  { %v1352_v27 = vpop.eup %1351 }
 0x1d0   :  { %v188_v28 = vadd.f32 1.0, %v1352_v27  ;;  %v1354_v29 = vpop.eup %1353 }
 0x1d2   :  { %1355 = vrcp.f32 %v188_v28 }
 0x1df   :  { %v1356_v30 = vpop.eup %1355 }
 0x1e0   :  { %v191_v31 = vmul.f32 %v1356_v30, %v1354_v29 }
 0x1e2   :  { %1282 = vmatpush3.msra.mxu1 %v191_v31 }
 0x1e3   :  { %1284 = vmatmul.mubr.msk.f32.vlgmr.msra.gmra.mxu1 %vm199_vm4, %v192_v32  ;;  %1286 = vmatprep.subr.mxu1 %v1378_v19  ;;  %v1212_v32 = vld [vmem:[%s1665_s5 + $0x10] sm:$0xff] }
 0x1e4   :  { %1288 = vmatprep.mubr.msk.f32.mxu1 %vm1379_vm3, %v1378_v19 }
 0x2a3   :  { %v269_v34 = vpop.f32.mrf.mxu1 }
 0x2a4   :  { %v1500_v35 = vadd.f32 %v269_v34, %v197_v33 }
 0x2a5   :  { %v1285_v37 = vpop.f32.mrf.mxu1 }
 0x2a6   :  { %1287 = vmatpush3.msra.mxu1 %v1500_v35  ;;  %v1215_v37 = vld [vmem:[%s1666_s7 + $0x10] sm:$0xff] }
 0x2a7   :  { %1289 = vmatmul.mubr.msk.f32.vlgmr.msra.gmra.mxu1 %vm199_vm4, %v273_v36  ;;  %1300 = vmatprep.subr.mxu1 %v1378_v19 }
 0x2a8   :  { %1302 = vmatprep.mubr.msk.f32.mxu1 %vm1379_vm3, %v1378_v19 }
 0x367   :  { %v349_v40 = vpop.f32.mrf.mxu1 }
 0x368   :  { %v350_v41 = vadd.f32 %v349_v40, %v278_v39  ;;  %v1219_v39 = vld [vmem:[%s1663_s3 + $0x30] sm:$0xff] }
 0x369   :  { %v1290_v42 = vpop.f32.mrf.mxu1 }
 0x36a   :  { %v353_v43 = vadd.f32 %v350_v41, %v1460_v10 }
 0x36c   :  { %368 = vrot.lane.b32.xlu1 %v353_v43, %s1380_s21  ;;  %373 = vrot.lane.b32.xlu0 %v353_v43, %s1377_s28 }
 0x36d   :  { %1291 = vmatprep.subr.mxu0 %v353_v43 }
 0x36e   :  { %1292 = vmatpush3.msra.mxu0 %v353_v43 }
 0x370   :  { %389 = vperm.xlu1 %1350, %v1193_v44   ;;  %394 = vperm.xlu0 %1349, %v1194_v45   ;;  %v1222_v45 = vld [vmem:[%s1660_s4 + $0x38] sm:$0xff] }
 0x374   :  { %574 = vperm.xlu1 %1350, %v1202_v46   ;;  %492 = vperm.xlu0 %1349, %v1199_v47   ;;  %v1204_v46 = vld [vmem:[%s1667_s9 + $0x8] sm:$0xff]  ;;  %v354_v47 = vld [vmem:[%s1667_s9] sm:$0xff] }
 0x3de   :  { %v374_v48 = vpop.permute.xlu0 %373  ;;  %v369_v49 = vpop.permute.xlu1 %368 }
 0x3df   :  { %1293 = vmatprep.subr.msk.mxu0 %vm76_vm2, %v374_v48 }
 0x3e0   :  { %1294 = vmatpush3.msk.msra.mxu0 %vm76_vm2, %v374_v48  ;;  %v1227_v48 = vld [vmem:[%s1661_s6 + $0x18] sm:$0xff] }
 0x3e1   :  { %1295 = vmatprep.subr.msk.mxu0 %vm370_vm5, %v369_v49 }
 0x3e2   :  { %1296 = vmatpush3.msk.msra.mxu0 %vm370_vm5, %v369_v49  ;;  %v1218_v49 = vld [vmem:[%s1667_s9 + $0x10] sm:$0xff] }
 0x3e3   :  { %1298 = vmatmul.mubr.msk.f32.vlgmr.msra.gmra.mxu0 %vm102_vm0, %v1192_v50  ;;  %v1229_v50 = vld [vmem:[%s1667_s9 + $0x18] sm:$0xff] }
 0x3e4   :  { %1316 = vmatprep.mubr.msk.f32.mxu0 %vm102_vm0, %v1205_v5 }
 0x3eb   :  { %v395_v51 = vpop.permute.xlu0 %394  ;;  %v390_v56 = vpop.permute.xlu1 %389 }
 0x3ef   :  { %v493_v0 = vpop.permute.xlu0 %492  ;;  %v575_v6 = vpop.permute.xlu1 %574 }
 0x4a3   :  { %v1299_v52 = vpop.f32.mrf.mxu0 }
 0x4a4   :  { %v475_v53 = vadd.f32 %v1299_v52, %v395_v51 }
 0x4a5   :  { %v469_v55 = vpop.f32.mrf.mxu0 }
 0x4a6   :  { %v1197_v54 = vmul.f32 -1.442695, %v475_v53  ;;  %v470_v57 = vadd.f32 %v469_v55, %v390_v56  ;;  %v1220_v53 = vld [vmem:[%s1663_s3 + $0x38] sm:$0xff] }
 0x4a8   :  { %1357 = vpow2.f32 %v1197_v54 }
 0x4a9   :  { %1359 = vtanh.f32 %v470_v57 }
 0x4b5   :  { %v1358_v58 = vpop.eup %1357 }
 0x4b6   :  { %v482_v59 = vadd.f32 1.0, %v1358_v58  ;;  %v1360_v60 = vpop.eup %1359 }
 0x4b8   :  { %1361 = vrcp.f32 %v482_v59 }
 0x4c5   :  { %v1362_v61 = vpop.eup %1361 }
 0x4c6   :  { %v485_v62 = vmul.f32 %v1362_v61, %v1360_v60 }
 0x4c8   :  { %1301 = vmatpush3.msra.mxu1 %v485_v62 }
 0x4c9   :  { %1303 = vmatmul.mubr.msk.f32.vlgmr.msra.gmra.mxu1 %vm199_vm4, %v1198_v63  ;;  %1305 = vmatprep.subr.mxu1 %v1378_v19 }
 0x4ca   :  { %1307 = vmatprep.mubr.msk.f32.mxu1 %vm1379_vm3, %v1378_v19 }
 0x589   :  { %v564_v1 = vpop.f32.mrf.mxu1 }
 0x58a   :  { %v1549_v2 = vadd.f32 %v564_v1, %v493_v0 }
 0x58b   :  { %v1304_v4 = vpop.f32.mrf.mxu1 }
 0x58c   :  { %1306 = vmatpush3.msra.mxu1 %v1549_v2 }
 0x58d   :  { %1308 = vmatmul.mubr.msk.f32.vlgmr.msra.gmra.mxu1 %vm199_vm4, %v1201_v3  ;;  %1319 = vmatprep.subr.mxu1 %v1378_v19 }
 0x58e   :  { %1321 = vmatprep.mubr.msk.f32.mxu1 %vm1379_vm3, %v1378_v19 }
 0x64d   :  { %v646_v7 = vpop.f32.mrf.mxu1 }
 0x64e   :  { %v647_v8 = vadd.f32 %v646_v7, %v575_v6 }
 0x64f   :  { %v1309_v9 = vpop.f32.mrf.mxu1 }
 0x650   :  { %v650_v10 = vadd.f32 %v647_v8, %v353_v43 }
 0x652   :  { %666 = vrot.lane.b32.xlu1 %v650_v10, %s1377_s28  ;;  %670 = vrot.lane.b32.xlu0 %v650_v10, %s1376_s27 }
 0x653   :  { %1310 = vmatprep.subr.mxu0 %v650_v10 }
 0x654   :  { %1311 = vmatpush3.msra.mxu0 %v650_v10 }
 0x656   :  { %686 = vperm.xlu1 %1350, %v1207_v11   ;;  %691 = vperm.xlu0 %1349, %v1208_v12  }
 0x65a   :  { %871 = vperm.xlu1 %1350, %v1216_v13   ;;  %789 = vperm.xlu0 %1349, %v1213_v14  }
 0x6c4   :  { %v671_v16 = vpop.permute.xlu0 %670  ;;  %v667_v17 = vpop.permute.xlu1 %666 }
 0x6c5   :  { %1312 = vmatprep.subr.msk.mxu0 %vm81_vm1, %v671_v16 }
 0x6c6   :  { %1313 = vmatpush3.msk.msra.mxu0 %vm81_vm1, %v671_v16 }
 0x6c7   :  { %1314 = vmatprep.subr.msk.mxu0 %vm76_vm2, %v667_v17 }
 0x6c8   :  { %1315 = vmatpush3.msk.msra.mxu0 %vm76_vm2, %v667_v17 }
 0x6c9   :  { %1317 = vmatmul.mubr.msk.f32.vlgmr.msra.gmra.mxu0 %vm102_vm0, %v1206_v18  ;;  %1324 = vmatprep.subr.mxu0 %v1378_v19 }
 0x6ca   :  { %1326 = vmatprep.mubr.msk.f32.mxu0 %vm1379_vm3, %v1378_v19 }
 0x6d1   :  { %v692_v20 = vpop.permute.xlu0 %691  ;;  %v687_v25 = vpop.permute.xlu1 %686 }
 0x6d5   :  { %v790_v33 = vpop.permute.xlu0 %789  ;;  %v872_v40 = vpop.permute.xlu1 %871 }
 0x789   :  { %v1318_v21 = vpop.f32.mrf.mxu0 }
 0x78a   :  { %v772_v22 = vadd.f32 %v1318_v21, %v692_v20 }
 0x78b   :  { %v766_v24 = vpop.f32.mrf.mxu0 }
 0x78c   :  { %v1211_v23 = vmul.f32 -1.442695, %v772_v22  ;;  %v767_v26 = vadd.f32 %v766_v24, %v687_v25 }
 0x78e   :  { %1363 = vpow2.f32 %v1211_v23 }
 0x78f   :  { %1365 = vtanh.f32 %v767_v26 }
 0x79b   :  { %v1364_v27 = vpop.eup %1363 }
 0x79c   :  { %v779_v28 = vadd.f32 1.0, %v1364_v27  ;;  %v1366_v29 = vpop.eup %1365 }
 0x79e   :  { %1367 = vrcp.f32 %v779_v28 }
 0x7ab   :  { %v1368_v30 = vpop.eup %1367 }
 0x7ac   :  { %v782_v31 = vmul.f32 %v1368_v30, %v1366_v29 }
 0x7ae   :  { %1320 = vmatpush3.msra.mxu1 %v782_v31 }
 0x7af   :  { %1322 = vmatmul.mubr.msk.f32.vlgmr.msra.gmra.mxu1 %vm199_vm4, %v1212_v32 }
 0x7b0   :  { %1335 = vmatprep.mubr.msk.f32.mxu1 %vm102_vm0, %v1219_v39 }
 0x86f   :  { %v861_v34 = vpop.f32.mrf.mxu1 }
 0x870   :  { %v1596_v36 = vadd.f32 %v861_v34, %v790_v33 }
 0x871   :  { %v1323_v38 = vpop.f32.mrf.mxu1 }
 0x872   :  { %1325 = vmatpush3.msra.mxu0 %v1596_v36 }
 0x873   :  { %1327 = vmatmul.mubr.msk.f32.vlgmr.msra.gmra.mxu0 %vm199_vm4, %v1215_v37  ;;  %1338 = vmatprep.subr.mxu0 %v1378_v19 }
 0x874   :  { %1340 = vmatprep.mubr.msk.f32.mxu0 %vm1379_vm3, %v1378_v19  ;;  %v1221_v19 = vld [vmem:[%s1660_s4 + $0x30] sm:$0xff] }
 0x933   :  { %v943_v41 = vpop.f32.mrf.mxu0 }
 0x934   :  { %v944_v42 = vadd.f32 %v943_v41, %v872_v40 }
 0x935   :  { %v1328_v43 = vpop.f32.mrf.mxu0 }
 0x936   :  { %v947_v44 = vadd.f32 %v944_v42, %v650_v10  ;;  %v1178_v42 = vstv %s1668_s10 }
 0x938   :  { %963 = vrot.lane.b32.xlu1 %v947_v44, %s1380_s21  ;;  %967 = vrot.lane.b32.xlu0 %v947_v44, %s1377_s28 }
 0x939   :  { %1329 = vmatprep.subr.mxu1 %v947_v44 }
 0x93a   :  { %1330 = vmatpush3.msra.mxu1 %v947_v44 }
 0x93c   :  { %983 = vperm.xlu1 %1350, %v1221_v19   ;;  %988 = vperm.xlu0 %1349, %v1222_v45  }
 0x940   :  { %655 = vperm.xlu1 %1350, %v1204_v46   ;;  %357 = vperm.xlu0 %1349, %v354_v47  }
 0x944   :  { %1086 = vperm.xlu1 %1350, %v1227_v48   ;;  %952 = vperm.xlu0 %1349, %v1218_v49  }
 0x948   :  { %1166 = vperm.xlu0 %1349, %v1229_v50  }
 0x9aa   :  { %v968_v51 = vpop.permute.xlu0 %967  ;;  %v964_v52 = vpop.permute.xlu1 %963 }
 0x9ab   :  { %1331 = vmatprep.subr.msk.mxu1 %vm76_vm2, %v968_v51 }
 0x9ac   :  { %1332 = vmatpush3.msk.msra.mxu1 %vm76_vm2, %v968_v51 }
 0x9ad   :  { %1333 = vmatprep.subr.msk.mxu1 %vm370_vm5, %v964_v52 }
 0x9ae   :  { %1334 = vmatpush3.msk.msra.mxu1 %vm370_vm5, %v964_v52 }
 0x9af   :  { %1336 = vmatmul.mubr.msk.f32.vlgmr.msra.gmra.mxu1 %vm102_vm0, %v1220_v53 }
 0x9b7   :  { %v989_v54 = vpop.permute.xlu0 %988  ;;  %v984_v59 = vpop.permute.xlu1 %983 }
 0x9bb   :  { %v358_v3 = vpop.permute.xlu0 %357  ;;  %v656_v4 = vpop.permute.xlu1 %655 }
 0x9bc   :  { %v658_v6 = vmul.f32 %v656_v4, %v1549_v2  ;;  %v360_v7 = vmul.f32 %v358_v3, %v1500_v35 }
 0x9be   :  { %v659_v9 = vrot.slane %v658_v6, 4  ;;  %v361_v10 = vrot.slane %v360_v7, 4 }
 0x9bf   :  { %v953_v5 = vpop.permute.xlu0 %952  ;;  %v1087_v20 = vpop.permute.xlu1 %1086 }
 0x9c0   :  { %v955_v8 = vmul.f32 %v953_v5, %v1596_v36  ;;  %v660_v12 = vadd.f32 %v659_v9, %v658_v6  ;;  %v362_v13 = vadd.f32 %v361_v10, %v360_v7 }
 0x9c2   :  { %v956_v11 = vrot.slane %v955_v8, 4  ;;  %v661_v16 = vrot.slane %v660_v12, 2  ;;  %v363_v17 = vrot.slane %v362_v13, 2 }
 0x9c3   :  { %v1167_v25 = vpop.permute.xlu0 %1166 }
 0x9c4   :  { %v957_v14 = vadd.f32 %v956_v11, %v955_v8  ;;  %v662_v22 = vadd.f32 %v661_v16, %v660_v12  ;;  %v364_v23 = vadd.f32 %v363_v17, %v362_v13 }
 0x9c6   :  { %v958_v18 = vrot.slane %v957_v14, 2  ;;  %v663_v27 = vrot.slane %v662_v22, 1  ;;  %v365_v28 = vrot.slane %v364_v23, 1 }
 0x9c8   :  { %v959_v26 = vadd.f32 %v958_v18, %v957_v14  ;;  %v664_v32 = vadd.f32 %v663_v27, %v662_v22  ;;  %v366_v33 = vadd.f32 %v365_v28, %v364_v23 }
 0x9ca   :  { %v960_v30 = vrot.slane %v959_v26, 1  ;;  %v665_v38 = vadd.f32 %v664_v32, %v366_v33 }
 0x9cc   :  { %v961_v36 = vadd.f32 %v960_v30, %v959_v26 }
 0x9ce   :  { %v962_v40 = vadd.f32 %v961_v36, %v665_v38 }
 0xa6f   :  { %v1337_v55 = vpop.f32.mrf.mxu1 }
 0xa70   :  { %v1069_v56 = vadd.f32 %v1337_v55, %v989_v54 }
 0xa71   :  { %v1063_v58 = vpop.f32.mrf.mxu1 }
 0xa72   :  { %v1225_v57 = vmul.f32 -1.442695, %v1069_v56  ;;  %v1064_v60 = vadd.f32 %v1063_v58, %v984_v59 }
 0xa74   :  { %1369 = vpow2.f32 %v1225_v57 }
 0xa75   :  { %1371 = vtanh.f32 %v1064_v60 }
 0xa81   :  { %v1370_v61 = vpop.eup %1369 }
 0xa82   :  { %v1076_v62 = vadd.f32 1.0, %v1370_v61  ;;  %v1372_v63 = vpop.eup %1371 }
 0xa84   :  { %1373 = vrcp.f32 %v1076_v62 }
 0xa91   :  { %v1374_v0 = vpop.eup %1373 }
 0xa92   :  { %v1079_v1 = vmul.f32 %v1374_v0, %v1372_v63 }
 0xa94   :  { %1339 = vmatpush3.msra.mxu0 %v1079_v1 }
 0xa95   :  { %1341 = vmatmul.mubr.msk.f32.vlgmr.msra.gmra.mxu0 %vm199_vm4, %v1226_v15 }
 0xb55   :  { %v1158_v21 = vpop.f32.mrf.mxu0 }
 0xb56   :  { %v1159_v24 = vadd.f32 %v1158_v21, %v1087_v20 }
 0xb57   :  { %v1342_v2 = vpop.f32.mrf.mxu0 }
 0xb58   :  { %v1169_v35 = vmul.f32 %v1167_v25, %v1159_v24 }
 0xb5a   :  { %v1170_v29 = vrot.slane %v1169_v35, 4 }
 0xb5c   :  { %v1171_v31 = vadd.f32 %v1170_v29, %v1169_v35 }
 0xb5e   :  { %v1172_v34 = vrot.slane %v1171_v31, 2 }
 0xb60   :  { %v1173_v37 = vadd.f32 %v1172_v34, %v1171_v31 }
 0xb62   :  { %v1174_v39 = vrot.slane %v1173_v37, 1 }
 0xb64   :  { %v1175_v41 = vadd.f32 %v1174_v39, %v1173_v37 }
 0xb66   :  { %v1176_v43 = vadd.f32 %v1175_v41, %v962_v40 }
 0xb68   :  { %v1179_v44 = vadd.f32 %v1178_v42, %v1176_v43 }
 0xb6a   :  { %1180 = vst [vmem:[%s1669_s11] sm:$0x1] %v1179_v44 }

</bundles_post_ra>
